<compile_context>
chip_gen: v6e
topology: v6e:2x2x1
jax: 0.10.0
libtpu: 0.0.40
codegen_flags: <defaults>
</compile_context>

<pallas_src>
import functools

import jax
import jax.numpy as jnp
from jax.experimental import pallas as pl
from jax.experimental.pallas import tpu as pltpu

EPS = 1e-5          # PyTorch nn.LayerNorm default eps
NEG_INF = -1e30     # additive key-padding mask value


def _round_up(x, m):
    return (x + m - 1) // m * m


def _layernorm(x, g, b):
    # Fused single-sweep statistics: sum and sum-of-squares, then
    # var = E[x^2] - E[x]^2 (clamped).
    inv_n = 1.0 / x.shape[-1]
    s1 = jnp.sum(x, axis=-1, keepdims=True)
    s2 = jnp.sum(x * x, axis=-1, keepdims=True)
    mu = s1 * inv_n
    var = jnp.maximum(s2 * inv_n - mu * mu, 0.0)
    return (x - mu) * jax.lax.rsqrt(var + EPS) * g + b


def _gelu_exact(x):
    # PyTorch nn.GELU default (erf form)
    return 0.5 * x * (1.0 + jax.lax.erf(x * 0.7071067811865476))


# ---------------------------------------------------------------------------
# Generation-aware sizing helpers
# ---------------------------------------------------------------------------
def _tpu_vmem_capacity():
    try:
        cap = getattr(pltpu.get_tpu_info(), "vmem_capacity_bytes", None)
        if cap:
            return int(cap)
    except Exception:
        pass
    return 128 * 1024 * 1024        # conservative v5e/v6e default


def _vmem_limit_bytes():
    phys = _tpu_vmem_capacity()
    # Never commit the full physical VMEM: ~96 MiB on 128 MiB parts
    # (v5e/v6e), ~48 MiB on 64 MiB parts (v7x).
    return int(min(phys * 3 // 4, 100 * 1024 * 1024))


def _pick_tiling(b, s_pad, dim, inner, mlp_dim, heads):
    """Choose images-per-grid-step (bt), padded batch and a VMEM limit."""
    phys = _tpu_vmem_capacity()
    vmem_limit = int(min(phys * 3 // 4, 100 * 1024 * 1024))

    # bf16 per-layer weight block (double-buffered by the pipeline).
    layer_w = 2 * (dim * 3 * inner + inner * dim + 2 * dim * mlp_dim)
    # Rough per-row VMEM residency of the fused block kernel.
    per_row = (dim * 4 * 4              # in/out activation blocks (2x buffered, f32)
               + dim * 4                # resident activation scratch (f32)
               + 3 * inner * 2 * 2      # bf16 qkv + per-head views
               + heads * s_pad * 4 * 2  # f32 scores + probabilities
               + inner * 2 * 2          # bf16 context (+ concat temp)
               + mlp_dim * 6            # f32 pre-GELU + bf16 hidden
               + dim * 4 * 3)           # LN / residual temporaries
    budget = vmem_limit - 2 * layer_w - (4 << 20)
    rows = max(s_pad, budget // max(per_row, 1))
    bt = max(1, min(b, rows // s_pad))

    # v7x has 2 TensorCores per chip: keep >= 2 blocks on the "parallel"
    # batch axis so the grid can be sharded across both cores.
    if phys <= 64 * 1024 * 1024 and b >= 2:
        bt = max(1, min(bt, b // 2))

    b_pad = _round_up(b, bt)
    return bt, b_pad, vmem_limit


# ---------------------------------------------------------------------------
# Kernel 1: patch embedding == LayerNorm(patch_dim) -> Linear -> LayerNorm(dim)
# Batch is folded into the row dimension; grid tiles rows (big tiles: kernel
# is HBM-bound).
# ---------------------------------------------------------------------------
def _patch_embed_kernel(x_ref, g1_ref, b1_ref, w_ref, bw_ref, g2_ref, b2_ref,
                        o_ref):
    x = _layernorm(x_ref[...], g1_ref[...], b1_ref[...])
    x = jnp.dot(x.astype(jnp.bfloat16), w_ref[...],
                preferred_element_type=jnp.float32) + bw_ref[...]
    o_ref[...] = _layernorm(x, g2_ref[...], b2_ref[...])


def patch_embed(patches2d, g1, b1, w_bf16, bw, g2, b2):
    m, pd = patches2d.shape
    dim = w_bf16.shape[1]
    tm = min(1024, _round_up(m, 8))          # large row tiles (HBM roofline)
    mp = _round_up(m, tm)
    if mp != m:
        patches2d = jnp.pad(patches2d, ((0, mp - m), (0, 0)))

    full = lambda shape: pl.BlockSpec(shape, lambda i: (0, 0))
    out = pl.pallas_call(
        _patch_embed_kernel,
        out_shape=jax.ShapeDtypeStruct((mp, dim), jnp.float32),
        grid=(mp // tm,),
        in_specs=[
            pl.BlockSpec((tm, pd), lambda i: (i, 0)),
            full((1, pd)), full((1, pd)),
            full((pd, dim)), full((1, dim)),
            full((1, dim)), full((1, dim)),
        ],
        out_specs=pl.BlockSpec((tm, dim), lambda i: (i, 0)),
        compiler_params=pltpu.CompilerParams(
            dimension_semantics=("parallel",),
            vmem_limit_bytes=_vmem_limit_bytes()),
    )(patches2d, g1, b1, w_bf16, bw, g2, b2)
    return out[:m]


# ---------------------------------------------------------------------------
# Kernel 2: the whole transformer stack, fused over depth.
# grid = (batch_tiles, depth); activations live in a VMEM scratch across the
# depth axis, per-layer weights are streamed via the BlockSpec index_map.
# ---------------------------------------------------------------------------
def _fused_blocks_kernel(x_ref, mask_ref, lag_ref, lab_ref, wqkv_ref, wo_ref,
                         bo_ref, lfg_ref, lfb_ref, w1_ref, b1_ref, w2_ref,
                         b2_ref, o_ref, x_sc, *, heads, dim_head, bt, s_pad):
    d = pl.program_id(1)
    inner = heads * dim_head

    # Load activations from HBM only once per batch tile (layer 0).
    @pl.when(d == 0)
    def _():
        x_sc[...] = x_ref[...]

    x = x_sc[...]                                       # (bt*s_pad, dim) f32

    # ---- multi-head attention (pre-norm) ----
    h = _layernorm(x, lag_ref[...], lab_ref[...])
    # QKV GEMM with f32 accumulation, result immediately narrowed to bf16
    # (it is only ever consumed as an MXU operand).
    qkv = jnp.dot(h.astype(jnp.bfloat16), wqkv_ref[...],
                  preferred_element_type=jnp.float32).astype(jnp.bfloat16)
    qkv3 = qkv.reshape(bt, s_pad, 3 * inner)            # leading-dim split only

    mask = mask_ref[...].reshape(1, 1, s_pad)           # (1,1,S): key-pad mask

    # One batched (over the whole batch tile) einsum pair per head; per-head
    # contexts concatenated lane-dense so Wo is a single wide GEMM.
    ctx_heads = []
    for hh in range(heads):
        c0 = hh * dim_head
        q_h = qkv3[:, :, c0:c0 + dim_head]                      # scale in Wq
        k_h = qkv3[:, :, inner + c0:inner + c0 + dim_head]
        v_h = qkv3[:, :, 2 * inner + c0:2 * inner + c0 + dim_head]
        dots = jnp.einsum("bqd,bkd->bqk", q_h, k_h,
                          preferred_element_type=jnp.float32) + mask
        dots = dots - jnp.max(dots, axis=-1, keepdims=True)
        p = jnp.exp(dots)
        p = p * pl.reciprocal(jnp.sum(p, axis=-1, keepdims=True), approx=True)
        ctx_h = jnp.einsum("bqk,bkd->bqd", p.astype(jnp.bfloat16), v_h,
                           preferred_element_type=jnp.float32)
        ctx_heads.append(ctx_h.astype(jnp.bfloat16))
    ctx = jnp.concatenate(ctx_heads, axis=-1).reshape(bt * s_pad, inner)

    attn = jnp.dot(ctx, wo_ref[...],
                   preferred_element_type=jnp.float32) + bo_ref[...]
    x = x + attn

    # ---- feed forward (pre-norm, exact GELU) ----
    hN = _layernorm(x, lfg_ref[...], lfb_ref[...])
    hN = jnp.dot(hN.astype(jnp.bfloat16), w1_ref[...],
                 preferred_element_type=jnp.float32) + b1_ref[...]
    hN = _gelu_exact(hN).astype(jnp.bfloat16)            # bf16 MLP hidden
    hN = jnp.dot(hN, w2_ref[...],
                 preferred_element_type=jnp.float32) + b2_ref[...]
    x = x + hN

    x_sc[...] = x                                         # carry to next layer

    @pl.when(d == pl.num_programs(1) - 1)
    def _():
        o_ref[...] = x


def transformer_stack(x, stacked, *, heads, dim_head, seq_real):
    b, s_pad, dim = x.shape
    depth = stacked["wqkv"].shape[0]
    inner = heads * dim_head
    mlp_dim = stacked["w1"].shape[2]

    bt, b_pad, vmem_limit = _pick_tiling(b, s_pad, dim, inner, mlp_dim, heads)
    if b_pad != b:                         # pad batch instead of forcing bt | b
        x = jnp.pad(x, ((0, b_pad - b), (0, 0), (0, 0)))
    m = bt * s_pad
    x2d = x.reshape(b_pad * s_pad, dim)

    # Key-padding mask, built once outside the depth loop.
    key_mask = jnp.where(jnp.arange(s_pad) < seq_real, 0.0, NEG_INF)
    key_mask = key_mask.astype(jnp.float32).reshape(1, s_pad)

    wspec = lambda r, c: pl.BlockSpec((None, r, c), lambda i, d: (d, 0, 0))
    kern = functools.partial(_fused_blocks_kernel, heads=heads,
                             dim_head=dim_head, bt=bt, s_pad=s_pad)

    out = pl.pallas_call(
        kern,
        out_shape=jax.ShapeDtypeStruct((b_pad * s_pad, dim), jnp.float32),
        grid=(b_pad // bt, depth),
        in_specs=[
            pl.BlockSpec((m, dim), lambda i, d: (i, 0)),     # activations
            pl.BlockSpec((1, s_pad), lambda i, d: (0, 0)),   # key-pad mask
            wspec(1, dim), wspec(1, dim),                    # ln_attn g, b
            wspec(dim, 3 * inner),                           # wqkv (bf16)
            wspec(inner, dim), wspec(1, dim),                # wo (bf16), bo
            wspec(1, dim), wspec(1, dim),                    # ln_ff g, b
            wspec(dim, mlp_dim), wspec(1, mlp_dim),          # w1 (bf16), b1
            wspec(mlp_dim, dim), wspec(1, dim),              # w2 (bf16), b2
        ],
        out_specs=pl.BlockSpec((m, dim), lambda i, d: (i, 0)),
        scratch_shapes=[pltpu.VMEM((m, dim), jnp.float32)],  # resident x
        compiler_params=pltpu.CompilerParams(
            dimension_semantics=("parallel", "arbitrary"),
            vmem_limit_bytes=vmem_limit),
    )(x2d, key_mask, stacked["ln_attn_g"], stacked["ln_attn_b"],
      stacked["wqkv"], stacked["wo"], stacked["bo"],
      stacked["ln_ff_g"], stacked["ln_ff_b"],
      stacked["w1"], stacked["b1"], stacked["w2"], stacked["b2"])
    return out.reshape(b_pad, s_pad, dim)[:b]


# ---------------------------------------------------------------------------
# Kernel 3: mlp_head == LayerNorm(dim) -> Linear(dim, num_classes_padded)
# ---------------------------------------------------------------------------
def _head_kernel(x_ref, g_ref, b_ref, w_ref, bw_ref, o_ref):
    x = _layernorm(x_ref[...], g_ref[...], b_ref[...])
    o_ref[...] = jnp.dot(x.astype(jnp.bfloat16), w_ref[...],
                         preferred_element_type=jnp.float32) + bw_ref[...]


def mlp_head(x, g, b, w_bf16, bw):
    bsz, dim = x.shape
    ncp = w_bf16.shape[1]
    full = lambda shape: pl.BlockSpec(shape, lambda i: (0, 0))
    return pl.pallas_call(
        _head_kernel,
        out_shape=jax.ShapeDtypeStruct((bsz, ncp), jnp.float32),
        grid=(1,),
        in_specs=[full((bsz, dim)), full((1, dim)), full((1, dim)),
                  full((dim, ncp)), full((1, ncp))],
        out_specs=full((bsz, ncp)),
        compiler_params=pltpu.CompilerParams(
            vmem_limit_bytes=_vmem_limit_bytes()),
    )(x, g, b, w_bf16, bw)


# ---------------------------------------------------------------------------
# Parameter preparation: stack per-layer weights along depth, fold the
# attention scale into Wq, cast matmul weights to bf16, pad classifier output
# to 128 lanes (lane-dense store).
# ---------------------------------------------------------------------------
def prepare_params(params, *, dim_head):
    bf = lambda a: a.astype(jnp.bfloat16)
    blocks = params["blocks"]
    stack = lambda name: jnp.stack([blk[name] for blk in blocks], axis=0)

    stacked = {k: stack(k) for k in ("ln_attn_g", "ln_attn_b", "bo",
                                     "ln_ff_g", "ln_ff_b", "b1", "b2")}
    wqkv = stack("wqkv")
    inner = wqkv.shape[-1] // 3
    # scale * (x @ Wq) == x @ (scale * Wq): fold dim_head**-0.5 into Wq.
    wqkv = wqkv.at[:, :, :inner].multiply(dim_head ** -0.5)
    stacked["wqkv"] = bf(wqkv)
    for k in ("wo", "w1", "w2"):
        stacked[k] = bf(stack(k))

    nc = params["head_w"].shape[1]
    ncp = _round_up(nc, 128)
    head_w = jnp.pad(params["head_w"], ((0, 0), (0, ncp - nc)))
    head_b = jnp.pad(params["head_b"], ((0, 0), (0, ncp - nc)))

    return {
        "pe_ln1_g": params["pe_ln1_g"], "pe_ln1_b": params["pe_ln1_b"],
        "pe_w": bf(params["pe_w"]), "pe_b": params["pe_b"],
        "pe_ln2_g": params["pe_ln2_g"], "pe_ln2_b": params["pe_ln2_b"],
        "cls_token": params["cls_token"],
        "pos_embedding": params["pos_embedding"],
        "head_ln_g": params["head_ln_g"], "head_ln_b": params["head_ln_b"],
        "head_w": bf(head_w), "head_b": head_b,
        "num_classes": nc,
        "stacked": stacked,
    }


# ---------------------------------------------------------------------------
# Full forward (Pallas kernels + cheap JAX layout glue)
# ---------------------------------------------------------------------------
def vit_forward(img, kparams, *, patch_size, heads, dim_head, pool="cls"):
    b, c, H, W = img.shape
    p = patch_size
    h, w = H // p, W // p
    n = h * w
    dim = kparams["pe_w"].shape[1]

    # rearrange 'b c (h p1) (w p2) -> b (h w) (p1 p2 c)'  (layout glue)
    x = img.reshape(b, c, h, p, w, p)
    x = jnp.transpose(x, (0, 2, 4, 3, 5, 1)).reshape(b * n, p * p * c)

    x = patch_embed(x, kparams["pe_ln1_g"], kparams["pe_ln1_b"],
                    kparams["pe_w"], kparams["pe_b"],
                    kparams["pe_ln2_g"], kparams["pe_ln2_b"])
    x = x.reshape(b, n, dim)

    cls = jnp.broadcast_to(kparams["cls_token"], (b, 1, dim))
    x = jnp.concatenate([cls, x], axis=1) + kparams["pos_embedding"][:, : n + 1]
    s = n + 1
    s_pad = _round_up(s, 8)
    if s_pad != s:                      # pad seq to sublane multiple once
        x = jnp.pad(x, ((0, 0), (0, s_pad - s), (0, 0)))

    x = transformer_stack(x, kparams["stacked"], heads=heads,
                          dim_head=dim_head, seq_real=s)
    x = x[:, :s]
    x = x.mean(axis=1) if pool == "mean" else x[:, 0]

    logits = mlp_head(x, kparams["head_ln_g"], kparams["head_ln_b"],
                      kparams["head_w"], kparams["head_b"])
    return logits[:, : kparams["num_classes"]]


# ---------------------------------------------------------------------------
# Pure-JAX f32 reference (for correctness check)
# ---------------------------------------------------------------------------
def vit_reference(img, params, *, patch_size, heads, dim_head, pool="cls"):
    b, c, H, W = img.shape
    p = patch_size
    h, w = H // p, W // p
    dim = params["pe_w"].shape[1]
    inner = heads * dim_head

    x = img.reshape(b, c, h, p, w, p).transpose(0, 2, 4, 3, 5, 1)
    x = x.reshape(b, h * w, p * p * c)
    x = _layernorm(x, params["pe_ln1_g"], params["pe_ln1_b"])
    x = x @ params["pe_w"] + params["pe_b"]
    x = _layernorm(x, params["pe_ln2_g"], params["pe_ln2_b"])

    n = h * w
    cls = jnp.broadcast_to(params["cls_token"], (b, 1, dim))
    x = jnp.concatenate([cls, x], axis=1) + params["pos_embedding"][:, : n + 1]
    s = n + 1

    for blk in params["blocks"]:
        hN = _layernorm(x, blk["ln_attn_g"], blk["ln_attn_b"])
        qkv = hN @ blk["wqkv"]
        q, k, v = jnp.split(qkv, 3, axis=-1)
        sh = lambda t: t.reshape(b, s, heads, dim_head).transpose(0, 2, 1, 3)
        q, k, v = sh(q), sh(k), sh(v)
        dots = jnp.einsum("bhid,bhjd->bhij", q, k) * (dim_head ** -0.5)
        attn = jax.nn.softmax(dots, axis=-1)
        o = jnp.einsum("bhij,bhjd->bhid", attn, v)
        o = o.transpose(0, 2, 1, 3).reshape(b, s, inner)
        x = x + o @ blk["wo"] + blk["bo"]
        hN = _layernorm(x, blk["ln_ff_g"], blk["ln_ff_b"])
        x = x + _gelu_exact(hN @ blk["w1"] + blk["b1"]) @ blk["w2"] + blk["b2"]

    x = x.mean(axis=1) if pool == "mean" else x[:, 0]
    x = _layernorm(x, params["head_ln_g"], params["head_ln_b"])
    return x @ params["head_w"] + params["head_b"]


# ---------------------------------------------------------------------------
# Deterministic parameter init (shapes per the module's __init__), f32
# ---------------------------------------------------------------------------
def init_params(key, *, channels, patch_size, num_patches, dim, num_classes,
                depth, heads, dim_head, mlp_dim):
    patch_dim = channels * patch_size ** 2
    inner = heads * dim_head
    keys = jax.random.split(key, 4)
    w_init = lambda k, shp: (0.02 * jax.random.normal(k, shp)).astype(jnp.float32)

    params = {
        "pe_ln1_g": jnp.ones((1, patch_dim), jnp.float32),
        "pe_ln1_b": jnp.zeros((1, patch_dim), jnp.float32),
        "pe_w": w_init(keys[0], (patch_dim, dim)),
        "pe_b": jnp.zeros((1, dim), jnp.float32),
        "pe_ln2_g": jnp.ones((1, dim), jnp.float32),
        "pe_ln2_b": jnp.zeros((1, dim), jnp.float32),
        "pos_embedding": jax.random.normal(keys[1], (1, num_patches + 1, dim),
                                           jnp.float32),
        "cls_token": jax.random.normal(keys[2], (1, 1, dim), jnp.float32),
        "head_ln_g": jnp.ones((1, dim), jnp.float32),
        "head_ln_b": jnp.zeros((1, dim), jnp.float32),
        "head_w": w_init(keys[3], (dim, num_classes)),
        "head_b": jnp.zeros((1, num_classes), jnp.float32),
        "blocks": [],
    }
    for d in range(depth):
        bk = jax.random.split(jax.random.fold_in(key, 100 + d), 4)
        params["blocks"].append({
            "ln_attn_g": jnp.ones((1, dim), jnp.float32),
            "ln_attn_b": jnp.zeros((1, dim), jnp.float32),
            "wqkv": w_init(bk[0], (dim, 3 * inner)),
            "wo": w_init(bk[1], (inner, dim)),
            "bo": jnp.zeros((1, dim), jnp.float32),
            "ln_ff_g": jnp.ones((1, dim), jnp.float32),
            "ln_ff_b": jnp.zeros((1, dim), jnp.float32),
            "w1": w_init(bk[2], (dim, mlp_dim)),
            "b1": jnp.zeros((1, mlp_dim), jnp.float32),
            "w2": w_init(bk[3], (mlp_dim, dim)),
            "b2": jnp.zeros((1, dim), jnp.float32),
        })
    return params


if __name__ == "__main__":
    B, C, H, W = 2, 3, 16, 16
    PATCH, DIM, CLASSES = 4, 32, 10
    HEADS, DIM_HEAD, MLP_DIM, DEPTH = 2, 16, 64, 2
    NUM_PATCHES = (H // PATCH) * (W // PATCH)

    key = jax.random.PRNGKey(0)
    pkey, ikey = jax.random.split(key)
    params = init_params(pkey, channels=C, patch_size=PATCH,
                         num_patches=NUM_PATCHES, dim=DIM, num_classes=CLASSES,
                         depth=DEPTH, heads=HEADS, dim_head=DIM_HEAD,
                         mlp_dim=MLP_DIM)
    img = jax.random.normal(ikey, (B, C, H, W), jnp.float32)

    kparams = prepare_params(params, dim_head=DIM_HEAD)
    out = vit_forward(img, kparams, patch_size=PATCH, heads=HEADS,
                      dim_head=DIM_HEAD, pool="cls")
    out = jax.block_until_ready(out)

    ref = vit_reference(img, params, patch_size=PATCH, heads=HEADS,
                        dim_head=DIM_HEAD, pool="cls")

    assert out.shape == (B, CLASSES), out.shape
    assert bool(jnp.all(jnp.isfinite(out)))
    # Kernel uses bf16 MXU operands (f32 accumulation) + approx reciprocal in
    # softmax; compare against the pure-f32 reference with matching tolerance.
    assert bool(jnp.allclose(out, ref, atol=5e-2, rtol=5e-2)), (out, ref)
    print("KERNEL_OK")
</pallas_src>

<mosaic_0001>
module attributes {stable_mosaic.version = 11 : i64} {
  func.func @_patch_embed_kernel(%arg0: i32, %arg1: memref<32x48xf32, #tpu.memory_space<vmem>>, %arg2: memref<1x48xf32, #tpu.memory_space<vmem>>, %arg3: memref<1x48xf32, #tpu.memory_space<vmem>>, %arg4: memref<48x32xbf16, #tpu.memory_space<vmem>>, %arg5: memref<1x32xf32, #tpu.memory_space<vmem>>, %arg6: memref<1x32xf32, #tpu.memory_space<vmem>>, %arg7: memref<1x32xf32, #tpu.memory_space<vmem>>, %arg8: memref<32x32xf32, #tpu.memory_space<vmem>>) attributes {dimension_semantics = [#tpu.dimension_semantics<parallel>], iteration_bounds = array<i64: 1>, scalar_prefetch = 0 : i64, scratch_operands = 0 : i64, tpu.core_type = #tpu.core_type<tc>, window_params = [{transform_indices = @transform_0, window_bounds = array<i64: 32, 48>}, {pipeline_mode = #tpu.pipeline_mode<synchronous>, transform_indices = @transform_1, window_bounds = array<i64: 1, 48>}, {pipeline_mode = #tpu.pipeline_mode<synchronous>, transform_indices = @transform_2, window_bounds = array<i64: 1, 48>}, {pipeline_mode = #tpu.pipeline_mode<synchronous>, transform_indices = @transform_3, window_bounds = array<i64: 48, 32>}, {pipeline_mode = #tpu.pipeline_mode<synchronous>, transform_indices = @transform_4, window_bounds = array<i64: 1, 32>}, {pipeline_mode = #tpu.pipeline_mode<synchronous>, transform_indices = @transform_5, window_bounds = array<i64: 1, 32>}, {pipeline_mode = #tpu.pipeline_mode<synchronous>, transform_indices = @transform_6, window_bounds = array<i64: 1, 32>}, {transform_indices = @transform_7, window_bounds = array<i64: 32, 32>}]} {
    %c0 = arith.constant 0 : index
    %c0_0 = arith.constant 0 : index
    %0 = vector.load %arg1[%c0, %c0_0] : memref<32x48xf32, #tpu.memory_space<vmem>>, vector<32x48xf32>
    %c0_1 = arith.constant 0 : index
    %c0_2 = arith.constant 0 : index
    %1 = vector.load %arg2[%c0_1, %c0_2] : memref<1x48xf32, #tpu.memory_space<vmem>>, vector<1x48xf32>
    %c0_3 = arith.constant 0 : index
    %c0_4 = arith.constant 0 : index
    %2 = vector.load %arg3[%c0_3, %c0_4] : memref<1x48xf32, #tpu.memory_space<vmem>>, vector<1x48xf32>
    %cst = arith.constant dense<0.000000e+00> : vector<32xf32>
    %3 = vector.multi_reduction <add>, %0, %cst [1] : vector<32x48xf32> to vector<32xf32>
    %4 = vector.shape_cast %3 : vector<32xf32> to vector<32x1xf32>
    %5 = arith.mulf %0, %0 : vector<32x48xf32>
    %cst_5 = arith.constant dense<0.000000e+00> : vector<32xf32>
    %6 = vector.multi_reduction <add>, %5, %cst_5 [1] : vector<32x48xf32> to vector<32xf32>
    %7 = vector.shape_cast %6 : vector<32xf32> to vector<32x1xf32>
    %cst_6 = arith.constant 0.020833334 : f32
    %8 = vector.broadcast %cst_6 : f32 to vector<32x1xf32>
    %9 = arith.mulf %4, %8 : vector<32x1xf32>
    %cst_7 = arith.constant 0.020833334 : f32
    %10 = vector.broadcast %cst_7 : f32 to vector<32x1xf32>
    %11 = arith.mulf %7, %10 : vector<32x1xf32>
    %12 = arith.mulf %9, %9 : vector<32x1xf32>
    %13 = arith.subf %11, %12 : vector<32x1xf32>
    %cst_8 = arith.constant 0.000000e+00 : f32
    %14 = vector.broadcast %cst_8 : f32 to vector<32x1xf32>
    %15 = arith.maximumf %13, %14 : vector<32x1xf32>
    %16 = vector.broadcast %9 : vector<32x1xf32> to vector<32x48xf32>
    %17 = arith.subf %0, %16 : vector<32x48xf32>
    %cst_9 = arith.constant 9.99999974E-6 : f32
    %18 = vector.broadcast %cst_9 : f32 to vector<32x1xf32>
    %19 = arith.addf %15, %18 : vector<32x1xf32>
    %20 = math.rsqrt %19 : vector<32x1xf32>
    %21 = vector.broadcast %20 : vector<32x1xf32> to vector<32x48xf32>
    %22 = arith.mulf %17, %21 : vector<32x48xf32>
    %23 = vector.broadcast %1 : vector<1x48xf32> to vector<32x48xf32>
    %24 = arith.mulf %22, %23 : vector<32x48xf32>
    %25 = vector.broadcast %2 : vector<1x48xf32> to vector<32x48xf32>
    %26 = arith.addf %24, %25 : vector<32x48xf32>
    %27 = arith.truncf %26 : vector<32x48xf32> to vector<32x48xbf16>
    %c0_10 = arith.constant 0 : index
    %c0_11 = arith.constant 0 : index
    %28 = vector.load %arg4[%c0_10, %c0_11] : memref<48x32xbf16, #tpu.memory_space<vmem>>, vector<48x32xbf16>
    %cst_12 = arith.constant dense<0.000000e+00> : vector<32x32xf32>
    %29 = tpu.matmul %27, %28, %cst_12 {dimension_numbers = #tpu.dot_dimension_numbers<[1], [0], [0], [1], [0, 0, 1, 1], [], []>} : vector<32x48xbf16>, vector<48x32xbf16>, vector<32x32xf32> -> vector<32x32xf32>
    %c0_13 = arith.constant 0 : index
    %c0_14 = arith.constant 0 : index
    %30 = vector.load %arg5[%c0_13, %c0_14] : memref<1x32xf32, #tpu.memory_space<vmem>>, vector<1x32xf32>
    %31 = vector.broadcast %30 : vector<1x32xf32> to vector<32x32xf32>
    %32 = arith.addf %29, %31 : vector<32x32xf32>
    %c0_15 = arith.constant 0 : index
    %c0_16 = arith.constant 0 : index
    %33 = vector.load %arg6[%c0_15, %c0_16] : memref<1x32xf32, #tpu.memory_space<vmem>>, vector<1x32xf32>
    %c0_17 = arith.constant 0 : index
    %c0_18 = arith.constant 0 : index
    %34 = vector.load %arg7[%c0_17, %c0_18] : memref<1x32xf32, #tpu.memory_space<vmem>>, vector<1x32xf32>
    %cst_19 = arith.constant dense<0.000000e+00> : vector<32xf32>
    %35 = vector.multi_reduction <add>, %32, %cst_19 [1] : vector<32x32xf32> to vector<32xf32>
    %36 = vector.shape_cast %35 : vector<32xf32> to vector<32x1xf32>
    %37 = arith.mulf %32, %32 : vector<32x32xf32>
    %cst_20 = arith.constant dense<0.000000e+00> : vector<32xf32>
    %38 = vector.multi_reduction <add>, %37, %cst_20 [1] : vector<32x32xf32> to vector<32xf32>
    %39 = vector.shape_cast %38 : vector<32xf32> to vector<32x1xf32>
    %cst_21 = arith.constant 3.125000e-02 : f32
    %40 = vector.broadcast %cst_21 : f32 to vector<32x1xf32>
    %41 = arith.mulf %36, %40 : vector<32x1xf32>
    %cst_22 = arith.constant 3.125000e-02 : f32
    %42 = vector.broadcast %cst_22 : f32 to vector<32x1xf32>
    %43 = arith.mulf %39, %42 : vector<32x1xf32>
    %44 = arith.mulf %41, %41 : vector<32x1xf32>
    %45 = arith.subf %43, %44 : vector<32x1xf32>
    %cst_23 = arith.constant 0.000000e+00 : f32
    %46 = vector.broadcast %cst_23 : f32 to vector<32x1xf32>
    %47 = arith.maximumf %45, %46 : vector<32x1xf32>
    %48 = vector.broadcast %41 : vector<32x1xf32> to vector<32x32xf32>
    %49 = arith.subf %32, %48 : vector<32x32xf32>
    %cst_24 = arith.constant 9.99999974E-6 : f32
    %50 = vector.broadcast %cst_24 : f32 to vector<32x1xf32>
    %51 = arith.addf %47, %50 : vector<32x1xf32>
    %52 = math.rsqrt %51 : vector<32x1xf32>
    %53 = vector.broadcast %52 : vector<32x1xf32> to vector<32x32xf32>
    %54 = arith.mulf %49, %53 : vector<32x32xf32>
    %55 = vector.broadcast %33 : vector<1x32xf32> to vector<32x32xf32>
    %56 = arith.mulf %54, %55 : vector<32x32xf32>
    %57 = vector.broadcast %34 : vector<1x32xf32> to vector<32x32xf32>
    %58 = arith.addf %56, %57 : vector<32x32xf32>
    %c0_25 = arith.constant 0 : index
    %c0_26 = arith.constant 0 : index
    %59 = vector.load %arg8[%c0_25, %c0_26] : memref<32x32xf32, #tpu.memory_space<vmem>>, vector<32x32xf32>
    tpu.vector_store %arg8[%c0_25, %c0_26], %58 {strides = array<i32>} : memref<32x32xf32, #tpu.memory_space<vmem>>, vector<32x32xf32>,
    return
  }
  func.func @transform_0(%arg0: i32) -> (i32, i32) {
    %c0_i32 = arith.constant 0 : i32
    %c0_i32_0 = arith.constant 0 : i32
    return %arg0, %c0_i32 : i32, i32
  }
  func.func @transform_1(%arg0: i32) -> (i32, i32) {
    %c0_i32 = arith.constant 0 : i32
    %c0_i32_0 = arith.constant 0 : i32
    %c0_i32_1 = arith.constant 0 : i32
    return %c0_i32, %c0_i32_0 : i32, i32
  }
  func.func @transform_2(%arg0: i32) -> (i32, i32) {
    %c0_i32 = arith.constant 0 : i32
    %c0_i32_0 = arith.constant 0 : i32
    %c0_i32_1 = arith.constant 0 : i32
    return %c0_i32, %c0_i32_0 : i32, i32
  }
  func.func @transform_3(%arg0: i32) -> (i32, i32) {
    %c0_i32 = arith.constant 0 : i32
    %c0_i32_0 = arith.constant 0 : i32
    %c0_i32_1 = arith.constant 0 : i32
    return %c0_i32, %c0_i32_0 : i32, i32
  }
  func.func @transform_4(%arg0: i32) -> (i32, i32) {
    %c0_i32 = arith.constant 0 : i32
    %c0_i32_0 = arith.constant 0 : i32
    %c0_i32_1 = arith.constant 0 : i32
    return %c0_i32, %c0_i32_0 : i32, i32
  }
  func.func @transform_5(%arg0: i32) -> (i32, i32) {
    %c0_i32 = arith.constant 0 : i32
    %c0_i32_0 = arith.constant 0 : i32
    %c0_i32_1 = arith.constant 0 : i32
    return %c0_i32, %c0_i32_0 : i32, i32
  }
  func.func @transform_6(%arg0: i32) -> (i32, i32) {
    %c0_i32 = arith.constant 0 : i32
    %c0_i32_0 = arith.constant 0 : i32
    %c0_i32_1 = arith.constant 0 : i32
    return %c0_i32, %c0_i32_0 : i32, i32
  }
  func.func @transform_7(%arg0: i32) -> (i32, i32) {
    %c0_i32 = arith.constant 0 : i32
    %c0_i32_0 = arith.constant 0 : i32
    return %arg0, %c0_i32 : i32, i32
  }
}

</mosaic_0001>

<bundles_post_ra>
// kernel: tpu_custom_call.1
= control target key start
LH: loop header
LB: loop body
LE: loop exit
PB: predicated region body
PF: predicated region fallthrough
CT: control target
= control target key end

     0   :  { %vm34_vm0 = vcmask 392192   ;;  %s535_s0 = inlined_call_operand.vmem [shape: f32[32,48], index: 0, kind: input, shape index: {}]   ;;  %s536_s1 = inlined_call_operand.vmem [shape: f32[1,48], index: 1, kind: input, shape index: {}]   ;;  %s537_s2 = inlined_call_operand.vmem [shape: f32[1,48], index: 2, kind: input, shape index: {}]   ;;  %s538_s3 = inlined_call_operand.vmem [shape: bf16[48,32], index: 3, kind: input, shape index: {}]   ;;  %s539_s4 = inlined_call_operand.vmem [shape: f32[1,32], index: 4, kind: input, shape index: {}]   ;;  %s540_s5 = inlined_call_operand.vmem [shape: f32[1,32], index: 5, kind: input, shape index: {}]   ;;  %s541_s6 = inlined_call_operand.vmem [shape: f32[1,32], index: 6, kind: input, shape index: {}]   ;;  %s542_s7 = inlined_call_operand.hbm [shape: f32[32,32], index: 7, kind: output, shape index: {}]  }
   0x1   :  { %v429_v0 = vld [vmem:[%s535_s0 + $0x10] sm:$0xff]  ;;  %v434_v1 = vld [vmem:[%s535_s0] sm:$0xff]  ;;  %v439_v2 = vld [vmem:[%s535_s0 + $0x18] sm:$0xff] }
   0x2   :  { %v41_v3 = vsel %vm34_vm0, %v429_v0, 0.0  ;;  %v35_v4 = vsel %vm34_vm0, %v434_v1, 0.0  ;;  %v448_v5 = vld [vmem:[%s535_s0 + $0x8] sm:$0xff]  ;;  %v44_v6 = vsel %vm34_vm0, %v439_v2, 0.0  ;;  %v47_v9 = vmul.f32 %v434_v1, %v434_v1 }
   0x3   :  { %42 = vadd.xlane.f32.xlu1 %v41_v3  ;;  %36 = vadd.xlane.f32.xlu0 %v35_v4  ;;  %v38_v7 = vsel %vm34_vm0, %v448_v5, 0.0  ;;  %v48_v8 = vmul.f32 %v448_v5, %v448_v5 }
   0x4   :  { %12 = vsyncpa [#allocation3], 0  ;;  %v51_v11 = vsel %vm34_vm0, %v47_v9, 0.0  ;;  %v50_v12 = vmul.f32 %v439_v2, %v439_v2  ;;  %v49_v13 = vmul.f32 %v429_v0, %v429_v0  ;;  %v342_v16 = vld [vmem:[%s538_s3 + $0x10] sm:$0xff]   ;;  %v343_v17 = vld [vmem:[%s538_s3 + $0x8] sm:$0xff]   ;;  %vm209_vm1 = vcmask 261120  }
   0x5   :  { %v54_v10 = vsel %vm34_vm0, %v48_v8, 0.0  ;;  %329 = vmatprep.subr.bf16.mxu0 %v342_v16  ;;  %v344_v18 = vld [vmem:[%s538_s3] sm:$0xff]  }
   0x6   :  { %v60_v14 = vsel %vm34_vm0, %v50_v12, 0.0  ;;  %v57_v15 = vsel %vm34_vm0, %v49_v13, 0.0  ;;  %330 = vmatpush3.bf16.msra.mxu0 %v342_v16  ;;  %v314_v54 = vld [vmem:[%s536_s1] ss:$0 sm:$0xff] }
   0x7   :  { %45 = vadd.xlane.f32.xlu1 %v44_v6  ;;  %39 = vadd.xlane.f32.xlu0 %v38_v7  ;;  %v315_v57 = vld [vmem:[%s537_s2] ss:$0 sm:$0xff] }
   0x8   :  { %331 = vmatprep.subr.bf16.mxu0 %v343_v17 }
   0xa   :  { %332 = vmatpush3.bf16.msra.mxu0 %v343_v17 }
   0xb   :  { %55 = vadd.xlane.f32.xlu1 %v54_v10  ;;  %52 = vadd.xlane.f32.xlu0 %v51_v11 }
   0xc   :  { %333 = vmatprep.subr.bf16.mxu0 %v344_v18 }
   0xe   :  { %334 = vmatpush3.bf16.msra.mxu0 %v344_v18 }
   0xf   :  { %61 = vadd.xlane.f32.xlu1 %v60_v14  ;;  %58 = vadd.xlane.f32.xlu0 %v57_v15 }
  0x8c   :  { %v43_v19 = vpop.xlane.xlu1 %42  ;;  %v37_v20 = vpop.xlane.xlu0 %36 }
  0x8d   :  { %v63_v23 = vmul.f32 0.020833334, %v37_v20  ;;  %v65_v25 = vmul.f32 0.020833334, %v43_v19 }
  0x8f   :  { %v71_v29 = vmul.f32 %v63_v23, %v63_v23  ;;  %v73_v35 = vmul.f32 %v65_v25, %v65_v25  ;;  %v83_v53 = vsub.f32 %v434_v1, %v63_v23  ;;  %v85_v62 = vsub.f32 %v429_v0, %v65_v25  ;;  %v316_v0 = vld [vmem:[%s539_s4] ss:$0 sm:$0xff] }
  0x90   :  { %v46_v21 = vpop.xlane.xlu1 %45  ;;  %v40_v22 = vpop.xlane.xlu0 %39 }
  0x91   :  { %v64_v24 = vmul.f32 0.020833334, %v40_v22  ;;  %v66_v26 = vmul.f32 0.020833334, %v46_v21 }
  0x93   :  { %v72_v30 = vmul.f32 %v64_v24, %v64_v24  ;;  %v74_v36 = vmul.f32 %v66_v26, %v66_v26  ;;  %v84_v51 = vsub.f32 %v448_v5, %v64_v24  ;;  %v86_v59 = vsub.f32 %v439_v2, %v66_v26 }
  0x94   :  { %v56_v27 = vpop.xlane.xlu1 %55  ;;  %v53_v28 = vpop.xlane.xlu0 %52 }
  0x95   :  { %v68_v31 = vmul.f32 0.020833334, %v56_v27  ;;  %v67_v32 = vmul.f32 0.020833334, %v53_v28 }
  0x97   :  { %v76_v33 = vsub.f32 %v68_v31, %v72_v30  ;;  %v75_v34 = vsub.f32 %v67_v32, %v71_v29 }
  0x98   :  { %v62_v37 = vpop.xlane.xlu1 %61  ;;  %v59_v38 = vpop.xlane.xlu0 %58 }
  0x99   :  { %v80_v39 = vmax.f32 %v76_v33, 0.0  ;;  %v79_v40 = vmax.f32 %v75_v34, 0.0  ;;  %v70_v41 = vmul.f32 0.020833334, %v62_v37  ;;  %v69_v42 = vmul.f32 0.020833334, %v59_v38 }
  0x9b   :  { %v88_v43 = vadd.f32 1e-05, %v80_v39  ;;  %v87_v44 = vadd.f32 1e-05, %v79_v40  ;;  %v78_v45 = vsub.f32 %v70_v41, %v74_v36  ;;  %v77_v46 = vsub.f32 %v69_v42, %v73_v35 }
  0x9d   :  { %345 = vrsqrt.f32 %v88_v43  ;;  %v82_v47 = vmax.f32 %v78_v45, 0.0  ;;  %v81_v48 = vmax.f32 %v77_v46, 0.0 }
  0x9e   :  { %347 = vrsqrt.f32 %v87_v44 }
  0x9f   :  { %v90_v49 = vadd.f32 1e-05, %v82_v47  ;;  %v89_v50 = vadd.f32 1e-05, %v81_v48 }
  0xa1   :  { %349 = vrsqrt.f32 %v90_v49 }
  0xa2   :  { %351 = vrsqrt.f32 %v89_v50 }
  0xaa   :  { %v346_v52 = vpop.eup %345 }
  0xab   :  { %v348_v55 = vpop.eup %347  ;;  %v96_v56 = vmul.f32 %v346_v52, %v84_v51 }
  0xac   :  { %v95_v58 = vmul.f32 %v348_v55, %v83_v53 }
  0xad   :  { %v106_v60 = vmul.f32 %v314_v54, %v96_v56 }
  0xae   :  { %v350_v61 = vpop.eup %349  ;;  %v105_v63 = vmul.f32 %v314_v54, %v95_v58 }
  0xaf   :  { %v352_v3 = vpop.eup %351  ;;  %v116_v1 = vadd.f32 %v315_v57, %v106_v60  ;;  %v98_v4 = vmul.f32 %v350_v61, %v86_v59 }
  0xb0   :  { %v115_v5 = vadd.f32 %v315_v57, %v105_v63  ;;  %v97_v6 = vmul.f32 %v352_v3, %v85_v62 }
  0xb1   :  { %v108_v7 = vmul.f32 %v314_v54, %v98_v4  ;;  %v322_v4 = vld [vmem:[%s540_s5] ss:$0 sm:$0xff]  ;;  %s383_s5 = smov [#allocation2]  }
  0xb2   :  { %v119_v8 = vpack.c.bf16 %v116_v1, %v115_v5  ;;  %v107_v9 = vmul.f32 %v314_v54, %v97_v6  ;;  %v323_v6 = vld [vmem:[%s541_s6] ss:$0 sm:$0xff]  ;;  %s303_s6 = sshll.u32 %s383_s5, 4  ;;  %s304_s6 = int_to_ptr.vmem [resolvable:$true] %s303_s6 }
  0xb3   :  { %v118_v10 = vadd.f32 %v315_v57, %v108_v7  ;;  %s361_s20 = scalar_lea.vmem %s304_s6, 512  ;;  %p366_p1 = scmp.lt.s32.totalorder %s304_s6, %s304_s6 }
  0xb4   :  { %335 = vmatprep.mubr.msk.bf16.mxu0 %vm34_vm0, %v119_v8  ;;  %v117_v11 = vadd.f32 %v315_v57, %v107_v9  ;;  %p362_p0 = scmp.ne.s32.totalorder %s304_s6, %s361_s20  ;;  %p367_p2 = scmp.lt.s32.totalorder %s361_s20, %s361_s20 }
  0xb6   :  { %v120_v12 = vpack.c.bf16 %v118_v10, %v117_v11  ;;  %p368_p3 = por %p367_p2, %p366_p1 }
  0xb8   :  { %336 = vmatmul.mubr.msk.bf16.vlgmr.msra.gmra.mxu0 %vm34_vm0, %v120_v12  ;;  %p369_p4 = pnand %p368_p3, %p362_p0 }
 0x178   :  { %v337_v2 = vpop.f32.mrf.mxu0 }
 0x179   :  { %v490_v13 = vadd.f32 %v337_v2, %v316_v0 }
 0x17a   :  { %v192_v14 = vpop.f32.mrf.mxu0 }
 0x17b   :  { %v492_v15 = vadd.f32 %v316_v0, %v192_v14  ;;  %v216_v16 = vsel %vm209_vm1, %v490_v13, 0.0  ;;  %v224_v27 = vmul.f32 %v490_v13, %v490_v13 }
 0x17c   :  { %217 = vadd.xlane.f32.xlu0 %v216_v16  ;;  %v338_v17 = vpop.f32.mrf.mxu0 }
 0x17d   :  { %v496_v18 = vadd.f32 %v338_v17, %v316_v0  ;;  %v210_v22 = vsel %vm209_vm1, %v492_v15, 0.0  ;;  %v222_v23 = vmul.f32 %v492_v15, %v492_v15  ;;  %v232_v29 = vsel %vm209_vm1, %v224_v27, 0.0 }
 0x17e   :  { %v195_v19 = vpop.f32.mrf.mxu0 }
 0x17f   :  { %v498_v20 = vadd.f32 %v316_v0, %v195_v19  ;;  %v219_v21 = vsel %vm209_vm1, %v496_v18, 0.0  ;;  %v226_v25 = vsel %vm209_vm1, %v222_v23, 0.0  ;;  %v225_v30 = vmul.f32 %v496_v18, %v496_v18 }
 0x180   :  { %220 = vadd.xlane.f32.xlu1 %v219_v21  ;;  %211 = vadd.xlane.f32.xlu0 %v210_v22 }
 0x181   :  { %v213_v24 = vsel %vm209_vm1, %v498_v20, 0.0  ;;  %v223_v26 = vmul.f32 %v498_v20, %v498_v20  ;;  %v235_v31 = vsel %vm209_vm1, %v225_v30, 0.0 }
 0x183   :  { %v229_v28 = vsel %vm209_vm1, %v223_v26, 0.0 }
 0x184   :  { %214 = vadd.xlane.f32.xlu1 %v213_v24  ;;  %227 = vadd.xlane.f32.xlu0 %v226_v25 }
 0x188   :  { %230 = vadd.xlane.f32.xlu1 %v229_v28  ;;  %233 = vadd.xlane.f32.xlu0 %v232_v29 }
 0x18c   :  { %236 = vadd.xlane.f32.xlu1 %v235_v31 }
 0x205   :  { %v218_v32 = vpop.xlane.xlu0 %217 }
 0x206   :  { %v240_v36 = vmul.f32 0.03125, %v218_v32 }
 0x208   :  { %v248_v43 = vmul.f32 %v240_v36, %v240_v36  ;;  %v260_v10 = vsub.f32 %v490_v13, %v240_v36 }
 0x209   :  { %v221_v33 = vpop.xlane.xlu1 %220  ;;  %v212_v34 = vpop.xlane.xlu0 %211 }
 0x20a   :  { %v238_v35 = vmul.f32 0.03125, %v212_v34  ;;  %v241_v44 = vmul.f32 0.03125, %v221_v33 }
 0x20c   :  { %v246_v39 = vmul.f32 %v238_v35, %v238_v35  ;;  %v249_v54 = vmul.f32 %v241_v44, %v241_v44  ;;  %v258_v3 = vsub.f32 %v492_v15, %v238_v35  ;;  %v261_v14 = vsub.f32 %v496_v18, %v241_v44 }
 0x20d   :  { %v215_v37 = vpop.xlane.xlu1 %214  ;;  %v228_v38 = vpop.xlane.xlu0 %227 }
 0x20e   :  { %v239_v40 = vmul.f32 0.03125, %v215_v37  ;;  %v242_v41 = vmul.f32 0.03125, %v228_v38 }
 0x210   :  { %v250_v42 = vsub.f32 %v242_v41, %v246_v39  ;;  %v247_v47 = vmul.f32 %v239_v40, %v239_v40  ;;  %v259_v7 = vsub.f32 %v498_v20, %v239_v40 }
 0x211   :  { %v231_v45 = vpop.xlane.xlu1 %230  ;;  %v234_v46 = vpop.xlane.xlu0 %233 }
 0x212   :  { %v254_v48 = vmax.f32 %v250_v42, 0.0  ;;  %v243_v49 = vmul.f32 0.03125, %v231_v45  ;;  %v244_v50 = vmul.f32 0.03125, %v234_v46 }
 0x214   :  { %v262_v51 = vadd.f32 1e-05, %v254_v48  ;;  %v251_v52 = vsub.f32 %v243_v49, %v247_v47  ;;  %v252_v53 = vsub.f32 %v244_v50, %v248_v43 }
 0x215   :  { %v237_v55 = vpop.xlane.xlu1 %236 }
 0x216   :  { %353 = vrsqrt.f32 %v262_v51  ;;  %v255_v56 = vmax.f32 %v251_v52, 0.0  ;;  %v256_v57 = vmax.f32 %v252_v53, 0.0  ;;  %v245_v58 = vmul.f32 0.03125, %v237_v55 }
 0x218   :  { %v263_v59 = vadd.f32 1e-05, %v255_v56  ;;  %v264_v60 = vadd.f32 1e-05, %v256_v57  ;;  %v253_v61 = vsub.f32 %v245_v58, %v249_v54 }
 0x21a   :  { %355 = vrsqrt.f32 %v263_v59  ;;  %v257_v62 = vmax.f32 %v253_v61, 0.0 }
 0x21b   :  { %357 = vrsqrt.f32 %v264_v60 }
 0x21c   :  { %v265_v63 = vadd.f32 1e-05, %v257_v62 }
 0x21e   :  { %359 = vrsqrt.f32 %v265_v63 }
 0x223   :  { %v354_v1 = vpop.eup %353 }
 0x224   :  { %v270_v5 = vmul.f32 %v354_v1, %v258_v3 }
 0x226   :  { %v280_v8 = vmul.f32 %v322_v4, %v270_v5 }
 0x227   :  { %v356_v9 = vpop.eup %355 }
 0x228   :  { %v358_v11 = vpop.eup %357  ;;  %v271_v12 = vmul.f32 %v356_v9, %v259_v7  ;;  %v290_v0 = vadd.f32 %v323_v6, %v280_v8 }
 0x229   :  { %v272_v2 = vmul.f32 %v358_v11, %v260_v10 }
 0x22a   :  { %v281_v15 = vmul.f32 %v322_v4, %v271_v12  ;;  %294 = vst.msk [vmem:[#allocation2] sm:$0xff] %vm209_vm1, %v290_v0 }
 0x22b   :  { %v360_v16 = vpop.eup %359  ;;  %v282_v17 = vmul.f32 %v322_v4, %v272_v2 }
 0x22c   :  { %v273_v19 = vmul.f32 %v360_v16, %v261_v14  ;;  %v291_v21 = vadd.f32 %v323_v6, %v281_v15 }
 0x22d   :  { %v292_v22 = vadd.f32 %v323_v6, %v282_v17 }
 0x22e   :  { %v283_v20 = vmul.f32 %v322_v4, %v273_v19  ;;  %295 = vst.msk [vmem:[#allocation2 + $0x8] sm:$0xff] %vm209_vm1, %v291_v21 }
 0x22f   :  { %296 = vst.msk [vmem:[#allocation2 + $0x10] sm:$0xff] %vm209_vm1, %v292_v22 }
 0x230   :  { %v293_v13 = vadd.f32 %v323_v6, %v283_v20 }
 0x232   :  { %297 = vst.msk [vmem:[#allocation2 + $0x18] sm:$0xff] %vm209_vm1, %v293_v13 }
 0x233   :  { %372 = shalt.err (!%p369_p4)
}
 0x234   :  { %s384_s21 = smov 128   ;;  %s385_s22 = smov 8  }
 0x235   :  { %309 = dma.vmem_to_hbm [thread:$0]  %s304_s6, 512, %s542_s7, [#allocation3], %s384_s21, %s384_s21, %s385_s22  }
 0x236   :  { %381 = dma.done.wait [#allocation3], 512  }
 0x237   :  { %382 = vsyncadd [#allocation3], 4294966784 }
 0x238   :  { %313 = vsyncpa [#allocation3], 1 }

</bundles_post_ra>
